<compile_context>
chip_gen: v7x
topology: tpu7x:2x2x1
jax: 0.10.0
libtpu: 0.0.40
codegen_flags: <defaults>
</compile_context>

<pallas_src>
import math

import jax
import jax.numpy as jnp
from jax.experimental import pallas as pl
from jax.experimental.pallas import tpu as pltpu


def _round_up(x, m):
    return ((x + m - 1) // m) * m


def _linear_kernel(x_ref, w_ref, b_ref, o_ref):
    # x: (tb, K) native dtype -> cast to bf16 in-register for the MXU.
    # w: (K, N_pad) bf16 (pre-transposed, lane-padded).  b: (1, N_pad) f32.
    x = x_ref[...].astype(jnp.bfloat16)
    y = jnp.dot(x, w_ref[...], preferred_element_type=jnp.float32)
    o_ref[...] = (y + b_ref[...]).astype(o_ref.dtype)


def prepare_params(weight, bias, *, param_dtype=jnp.bfloat16):
    """One-time parameter prep (call at init / cache it, NOT per forward call).

    weight: (dim_output, dim_ft)  -- PyTorch nn.Linear layout
    bias:   (dim_output,)
    Returns:
      w_t: (dim_ft, n_pad) in `param_dtype`, n_pad = round_up(dim_output, 128)
      b2d: (1, n_pad) float32
    """
    dim_output, dim_ft = weight.shape
    n_pad = _round_up(dim_output, 128)
    w_t = weight.T.astype(param_dtype)                      # (dim_ft, dim_output)
    b2d = bias.reshape(1, dim_output).astype(jnp.float32)   # (1, dim_output)
    if n_pad != dim_output:
        w_t = jnp.pad(w_t, ((0, 0), (0, n_pad - dim_output)))
        b2d = jnp.pad(b2d, ((0, 0), (0, n_pad - dim_output)))
    return w_t, b2d


def encoder_forward(ft, w_t, b2d, *, dim_output=None, out_dtype=None,
                    target_tile_bytes=2 << 20, max_block_b=4096):
    """Pallas equivalent of Encoder.forward using prepared params.

    ft: (B, dim_ft).  (w_t, b2d) from prepare_params().
    """
    B, dim_ft = ft.shape
    k_dim, n_pad = w_t.shape
    assert k_dim == dim_ft, "prepared weight does not match ft feature dim"
    if dim_output is None:
        dim_output = n_pad
    if out_dtype is None:
        out_dtype = ft.dtype

    in_bytes = ft.dtype.itemsize
    out_bytes = jnp.dtype(out_dtype).itemsize
    w_bytes = w_t.size * w_t.dtype.itemsize
    b_bytes = b2d.size * b2d.dtype.itemsize

    # Row tile: ~target_tile_bytes of streamed (ft + out) per grid step,
    # multiple of 16 rows (bf16 sublane packing), never larger than B.
    per_row = dim_ft * in_bytes + n_pad * out_bytes
    tb = max(16, min(max_block_b, target_tile_bytes // per_row))
    tb = (tb // 16) * 16
    if tb >= B:
        tb = B                       # single tile covering the whole batch
    grid_b = pl.cdiv(B, tb)          # ragged last tile handled by Pallas masking

    # Deeper buffering on the ft stream when each per-step copy is tiny
    # (hides the ~0.35 us per-grid-step overhead on long grids).
    x_tile_bytes = tb * dim_ft * in_bytes
    x_buffers = 3 if (grid_b > 2 and x_tile_bytes < (256 << 10)) else None

    x_bufs_n = x_buffers if x_buffers is not None else 2
    vmem_need = (w_bytes + b_bytes                     # resident, single-buffered
                 + x_bufs_n * x_tile_bytes             # pipelined ft tiles
                 + 2 * tb * n_pad * out_bytes)         # pipelined out tiles
    vmem_limit = int(min(128 << 20, max(32 << 20, int(1.5 * vmem_need))))

    flops = 2 * B * dim_ft * n_pad
    bytes_accessed = (B * dim_ft * in_bytes + w_bytes + b_bytes
                      + B * n_pad * out_bytes)

    def run(use_pipeline_mode):
        def spec(shape, index_map, buffers=None):
            if use_pipeline_mode and buffers is not None:
                return pl.BlockSpec(shape, index_map,
                                    pipeline_mode=pl.Buffered(buffers))
            return pl.BlockSpec(shape, index_map)

        return pl.pallas_call(
            _linear_kernel,
            out_shape=jax.ShapeDtypeStruct((B, n_pad), out_dtype),
            grid_spec=pltpu.PrefetchScalarGridSpec(
                num_scalar_prefetch=0,
                grid=(grid_b,),
                in_specs=[
                    # ft: tiled over batch, streamed / pipelined.
                    spec((tb, dim_ft), lambda i: (i, 0), buffers=x_buffers),
                    # weight & bias: constant index_map -> VMEM-resident across
                    # the grid; single buffer (never re-fetched).
                    spec((dim_ft, n_pad), lambda i: (0, 0), buffers=1),
                    spec((1, n_pad), lambda i: (0, 0), buffers=1),
                ],
                out_specs=pl.BlockSpec((tb, n_pad), lambda i: (i, 0)),
            ),
            compiler_params=pltpu.CompilerParams(
                # Independent row tiles -> megacore sharding on v7x; a harmless
                # serial loop annotation on v5e/v6e.
                dimension_semantics=("parallel",),
                vmem_limit_bytes=vmem_limit,
            ),
            cost_estimate=pl.CostEstimate(
                flops=flops, transcendentals=0, bytes_accessed=bytes_accessed),
        )(ft, w_t, b2d)

    try:
        out = run(True)
    except Exception:
        # pipeline_mode / pl.Buffered not supported by this jax build: fall
        # back to default double-buffering (identical numerics).
        out = run(False)

    if n_pad != dim_output:
        # TODO(synk): let downstream consume the 128-lane-padded output directly
        # to avoid this slice copy.
        out = out[:, :dim_output]
    return out


def init_params(key, dim_ft, dim_output):
    """Deterministic param init mimicking the PyTorch module __init__."""
    kw, kb = jax.random.split(key)
    # nn.init.xavier_uniform_ on weight of shape (dim_output, dim_ft)
    limit = math.sqrt(6.0 / (dim_ft + dim_output))
    weight = jax.random.uniform(
        kw, (dim_output, dim_ft), minval=-limit, maxval=limit, dtype=jnp.float32
    )
    # nn.Linear default bias init: U(-1/sqrt(fan_in), 1/sqrt(fan_in))
    bound = 1.0 / math.sqrt(dim_ft)
    bias = jax.random.uniform(
        kb, (dim_output,), minval=-bound, maxval=bound, dtype=jnp.float32
    )
    return weight, bias


if __name__ == "__main__":
    key = jax.random.PRNGKey(0)
    k_in, k_param = jax.random.split(key)

    B = 8            # batch of feature vectors
    dim_ft = 32      # config.dim_ft
    dim_output = 64  # config.dim_output

    ft = jax.random.normal(k_in, (B, dim_ft), dtype=jnp.float32)
    weight, bias = init_params(k_param, dim_ft, dim_output)

    # One-time parameter prep (transpose / cast / lane-pad) outside the hot path.
    w_t, b2d = prepare_params(weight, bias)

    embed = encoder_forward(ft, w_t, b2d, dim_output=dim_output)
    embed = jax.block_until_ready(embed)

    # Reference checks.
    ref_f32 = ft @ weight.T + bias
    ref_bf16 = (
        jnp.dot(
            ft.astype(jnp.bfloat16),
            weight.T.astype(jnp.bfloat16),
            preferred_element_type=jnp.float32,
        )
        + bias
    )
    assert embed.shape == (B, dim_output)
    assert jnp.allclose(embed, ref_bf16, atol=1e-3, rtol=1e-3)
    assert jnp.allclose(embed, ref_f32, atol=2e-2, rtol=2e-2)

    print("KERNEL_OK")
</pallas_src>

<mosaic_0001>
module attributes {stable_mosaic.version = 11 : i64} {
  func.func @_linear_kernel(%arg0: i32, %arg1: memref<8x32xf32, #tpu.memory_space<vmem>>, %arg2: memref<32x128xbf16, #tpu.memory_space<vmem>>, %arg3: memref<1x128xf32, #tpu.memory_space<vmem>>, %arg4: memref<8x128xf32, #tpu.memory_space<vmem>>) attributes {dimension_semantics = [#tpu.dimension_semantics<parallel>], iteration_bounds = array<i64: 1>, scalar_prefetch = 0 : i64, scratch_operands = 0 : i64, tpu.core_type = #tpu.core_type<tc>, window_params = [{transform_indices = @transform_0, window_bounds = array<i64: 8, 32>}, {pipeline_mode = #tpu.pipeline_mode<synchronous>, transform_indices = @transform_1, window_bounds = array<i64: 32, 128>}, {pipeline_mode = #tpu.pipeline_mode<synchronous>, transform_indices = @transform_2, window_bounds = array<i64: 1, 128>}, {transform_indices = @transform_3, window_bounds = array<i64: 8, 128>}]} {
    %c0 = arith.constant 0 : index
    %c0_0 = arith.constant 0 : index
    %0 = vector.load %arg1[%c0, %c0_0] : memref<8x32xf32, #tpu.memory_space<vmem>>, vector<8x32xf32>
    %1 = arith.truncf %0 : vector<8x32xf32> to vector<8x32xbf16>
    %c0_1 = arith.constant 0 : index
    %c0_2 = arith.constant 0 : index
    %2 = vector.load %arg2[%c0_1, %c0_2] : memref<32x128xbf16, #tpu.memory_space<vmem>>, vector<32x128xbf16>
    %cst = arith.constant dense<0.000000e+00> : vector<8x128xf32>
    %3 = tpu.matmul %1, %2, %cst {dimension_numbers = #tpu.dot_dimension_numbers<[1], [0], [0], [1], [0, 0, 1, 1], [], []>} : vector<8x32xbf16>, vector<32x128xbf16>, vector<8x128xf32> -> vector<8x128xf32>
    %c0_3 = arith.constant 0 : index
    %c0_4 = arith.constant 0 : index
    %4 = vector.load %arg3[%c0_3, %c0_4] : memref<1x128xf32, #tpu.memory_space<vmem>>, vector<1x128xf32>
    %5 = vector.broadcast %4 : vector<1x128xf32> to vector<8x128xf32>
    %6 = arith.addf %3, %5 : vector<8x128xf32>
    %c0_5 = arith.constant 0 : index
    %c0_6 = arith.constant 0 : index
    %7 = vector.load %arg4[%c0_5, %c0_6] : memref<8x128xf32, #tpu.memory_space<vmem>>, vector<8x128xf32>
    tpu.vector_store %arg4[%c0_5, %c0_6], %6 {strides = array<i32>} : memref<8x128xf32, #tpu.memory_space<vmem>>, vector<8x128xf32>,
    return
  }
  func.func @transform_0(%arg0: i32) -> (i32, i32) {
    %c0_i32 = arith.constant 0 : i32
    %c0_i32_0 = arith.constant 0 : i32
    return %arg0, %c0_i32 : i32, i32
  }
  func.func @transform_1(%arg0: i32) -> (i32, i32) {
    %c0_i32 = arith.constant 0 : i32
    %c0_i32_0 = arith.constant 0 : i32
    %c0_i32_1 = arith.constant 0 : i32
    return %c0_i32, %c0_i32_0 : i32, i32
  }
  func.func @transform_2(%arg0: i32) -> (i32, i32) {
    %c0_i32 = arith.constant 0 : i32
    %c0_i32_0 = arith.constant 0 : i32
    %c0_i32_1 = arith.constant 0 : i32
    return %c0_i32, %c0_i32_0 : i32, i32
  }
  func.func @transform_3(%arg0: i32) -> (i32, i32) {
    %c0_i32 = arith.constant 0 : i32
    %c0_i32_0 = arith.constant 0 : i32
    return %arg0, %c0_i32 : i32, i32
  }
}

module attributes {stable_mosaic.version = 11 : i64} {
  func.func @_linear_kernel(%arg0: i32, %arg1: memref<8x32xf32, #tpu.memory_space<vmem>>, %arg2: memref<32x128xbf16, #tpu.memory_space<vmem>>, %arg3: memref<1x128xf32, #tpu.memory_space<vmem>>, %arg4: memref<8x128xf32, #tpu.memory_space<vmem>>) attributes {dimension_semantics = [#tpu.dimension_semantics<parallel>], iteration_bounds = array<i64: 1>, scalar_prefetch = 0 : i64, scratch_operands = 0 : i64, tpu.core_type = #tpu.core_type<tc>, window_params = [{transform_indices = @transform_0, window_bounds = array<i64: 8, 32>}, {pipeline_mode = #tpu.pipeline_mode<synchronous>, transform_indices = @transform_1, window_bounds = array<i64: 32, 128>}, {pipeline_mode = #tpu.pipeline_mode<synchronous>, transform_indices = @transform_2, window_bounds = array<i64: 1, 128>}, {transform_indices = @transform_3, window_bounds = array<i64: 8, 128>}]} {
    %c0 = arith.constant 0 : index
    %c0_0 = arith.constant 0 : index
    %0 = vector.load %arg1[%c0, %c0_0] : memref<8x32xf32, #tpu.memory_space<vmem>>, vector<8x32xf32>
    %1 = arith.truncf %0 : vector<8x32xf32> to vector<8x32xbf16>
    %c0_1 = arith.constant 0 : index
    %c0_2 = arith.constant 0 : index
    %2 = vector.load %arg2[%c0_1, %c0_2] : memref<32x128xbf16, #tpu.memory_space<vmem>>, vector<32x128xbf16>
    %cst = arith.constant dense<0.000000e+00> : vector<8x128xf32>
    %3 = tpu.matmul %1, %2, %cst {dimension_numbers = #tpu.dot_dimension_numbers<[1], [0], [0], [1], [0, 0, 1, 1], [], []>} : vector<8x32xbf16>, vector<32x128xbf16>, vector<8x128xf32> -> vector<8x128xf32>
    %c0_3 = arith.constant 0 : index
    %c0_4 = arith.constant 0 : index
    %4 = vector.load %arg3[%c0_3, %c0_4] : memref<1x128xf32, #tpu.memory_space<vmem>>, vector<1x128xf32>
    %5 = vector.broadcast %4 : vector<1x128xf32> to vector<8x128xf32>
    %6 = arith.addf %3, %5 : vector<8x128xf32>
    %c0_5 = arith.constant 0 : index
    %c0_6 = arith.constant 0 : index
    %7 = vector.load %arg4[%c0_5, %c0_6] : memref<8x128xf32, #tpu.memory_space<vmem>>, vector<8x128xf32>
    tpu.vector_store %arg4[%c0_5, %c0_6], %6 {strides = array<i32>} : memref<8x128xf32, #tpu.memory_space<vmem>>, vector<8x128xf32>,
    return
  }
  func.func @transform_0(%arg0: i32) -> (i32, i32) {
    %c0_i32 = arith.constant 0 : i32
    %c0_i32_0 = arith.constant 0 : i32
    return %arg0, %c0_i32 : i32, i32
  }
  func.func @transform_1(%arg0: i32) -> (i32, i32) {
    %c0_i32 = arith.constant 0 : i32
    %c0_i32_0 = arith.constant 0 : i32
    %c0_i32_1 = arith.constant 0 : i32
    return %c0_i32, %c0_i32_0 : i32, i32
  }
  func.func @transform_2(%arg0: i32) -> (i32, i32) {
    %c0_i32 = arith.constant 0 : i32
    %c0_i32_0 = arith.constant 0 : i32
    %c0_i32_1 = arith.constant 0 : i32
    return %c0_i32, %c0_i32_0 : i32, i32
  }
  func.func @transform_3(%arg0: i32) -> (i32, i32) {
    %c0_i32 = arith.constant 0 : i32
    %c0_i32_0 = arith.constant 0 : i32
    return %arg0, %c0_i32 : i32, i32
  }
}

</mosaic_0001>

<bundles_post_ra>
// kernel: tpu_custom_call.1
= control target key start
LH: loop header
LB: loop body
LE: loop exit
PB: predicated region body
PF: predicated region fallthrough
CT: control target
= control target key end

     0   :  { %8 = vsyncpa [#allocation3], 0  ;;  %s297_s0 = inlined_call_operand.hbm [shape: f32[8,32], index: 0, kind: input, shape index: {}]   ;;  %s298_s1 = inlined_call_operand.hbm [shape: bf16[32,128], index: 1, kind: input, shape index: {}]   ;;  %s299_s2 = inlined_call_operand.vmem [shape: f32[1,128], index: 2, kind: input, shape index: {}]   ;;  %s300_s3 = inlined_call_operand.hbm [shape: f32[8,128], index: 3, kind: output, shape index: {}]  }
   0x1   :  { %9 = vsyncpa [#allocation6], 0 }
   0x2   :  { %10 = vsyncpa [#allocation4], 0  ;;  %s224_s12 = smov [#allocation2]   ;;  %s225_s14 = smov [#allocation5]  }
   0x3   :  { %s17_s13 = sshll.u32 %s224_s12, 4  ;;  %s26_s15 = sshll.u32 %s225_s14, 4  ;;  %s18_s13 = int_to_ptr.vmem [resolvable:$true] %s17_s13  ;;  %s251_s15 = int_to_ptr.vmem [resolvable:$true] %s26_s15 }
   0x4   :  { %s152_s18 = scalar_lea.hbm %s297_s0, 128 }
   0x5   :  { %p153_p0 = scmp.ne.s32.totalorder %s297_s0, %s152_s18  ;;  %p156_p1 = scmp.lt.u32.totalorder %s152_s18, %s297_s0 }
   0x7   :  { %p158_p2 = pnand %p156_p1, %p153_p0 }
   0x9   :  { %161 = shalt.err (!%p158_p2)
}
   0xa   :  { %s162_s23 = scalar_lea.vmem %s18_s13, 128  ;;  %p167_p4 = scmp.lt.s32.totalorder %s18_s13, %s18_s13 }
   0xb   :  { %p163_p3 = scmp.ne.s32.totalorder %s18_s13, %s162_s23  ;;  %p168_p5 = scmp.lt.s32.totalorder %s162_s23, %s162_s23 }
   0xd   :  { %p169_p6 = por %p168_p5, %p167_p4 }
   0xf   :  { %p170_p7 = pnand %p169_p6, %p163_p3 }
  0x11   :  { %173 = shalt.err (!%p170_p7)
}
  0x12   :  { %20 = dma.hbm_to_vmem [thread:$0]  %s297_s0, 128, %s18_s13, [#allocation3]  }
  0x13   :  { %s174_s28 = scalar_lea.hbm %s298_s1, 256 }
  0x14   :  { %p175_p8 = scmp.ne.s32.totalorder %s298_s1, %s174_s28  ;;  %p178_p9 = scmp.lt.u32.totalorder %s174_s28, %s298_s1 }
  0x16   :  { %p180_p10 = pnand %p178_p9, %p175_p8 }
  0x18   :  { %183 = shalt.err (!%p180_p10)
}
  0x19   :  { %s184_s6 = scalar_lea.vmem %s251_s15, 256  ;;  %p189_p12 = scmp.lt.s32.totalorder %s251_s15, %s251_s15 }
  0x1a   :  { %p185_p11 = scmp.ne.s32.totalorder %s251_s15, %s184_s6  ;;  %p190_p13 = scmp.lt.s32.totalorder %s184_s6, %s184_s6 }
  0x1c   :  { %p191_p0 = por %p190_p13, %p189_p12 }
  0x1e   :  { %p192_p1 = pnand %p191_p0, %p185_p11 }
  0x20   :  { %195 = shalt.err (!%p192_p1)
}
  0x21   :  { %s226_s0 = smov 64   ;;  %s227_s7 = smov 4  }
  0x22   :  { %32 = dma.hbm_to_vmem [thread:$0]  %s298_s1, 256, %s251_s15, [#allocation6], %s226_s0, %s226_s0, %s227_s7  }
  0x23   :  { %218 = dma.done.wait [#allocation3], 128  }
  0x24   :  { %219 = vsyncadd [#allocation3], 4294967168 }
  0x25   :  { %220 = dma.done.wait [#allocation6], 256  }
  0x26   :  { %221 = vsyncadd [#allocation6], 4294967040  ;;  %v228_v0 = vmov 0.0   ;;  %vm229_vm0 = vmmov 0   ;;  %v150_v1 = vld [vmem:[#allocation5] sm:$0xff]   ;;  %v151_v2 = vld [vmem:[#allocation5 + $0x8] sm:$0xff]  }
  0x27   :  { %135 = vmatprep.subr.bf16.mxu0 %v228_v0  ;;  %139 = vmatprep.mubr.msk.bf16.mxu0 %vm229_vm0, %v228_v0  ;;  %v42_v3 = vld [vmem:[#allocation2] sm:$0xff]  ;;  %vm67_vm1 = vcmask 261120   ;;  %s230_s1 = smov [#allocation7]  }
  0x28   :  { %136 = vmatpush3.bf16.msra.mxu0 %v150_v1  ;;  %v43_v4 = vpack.c.bf16 %v42_v3, %v42_v3  ;;  %v128_v5 = vld [vmem:[%s299_s2] ss:$0 sm:$0xff]  ;;  %s118_s12 = sshll.u32 %s230_s1, 4  ;;  %s119_s12 = int_to_ptr.vmem [resolvable:$true] %s118_s12 }
  0x29   :  { %137 = vmatprep.subr.bf16.mxu0 %v228_v0  ;;  %s196_s13 = scalar_lea.vmem %s119_s12, 128  ;;  %p201_p3 = scmp.lt.s32.totalorder %s119_s12, %s119_s12 }
  0x2a   :  { %p197_p2 = scmp.ne.s32.totalorder %s119_s12, %s196_s13  ;;  %p202_p4 = scmp.lt.s32.totalorder %s196_s13, %s196_s13 }
  0x2c   :  { %138 = vmatpush3.bf16.msra.mxu0 %v151_v2  ;;  %p203_p5 = por %p202_p4, %p201_p3 }
  0x2e   :  { %p204_p6 = pnand %p203_p5, %p197_p2 }
  0x2f   :  { %140 = vmatmul.mubr.msk.bf16.vlgmr.msra.gmra.mrb[0].mxu0 %vm67_vm1, %v43_v4 }
 0x102   :  { %v105_v6 = vpop.f32.mrb[0].mxu0 }
 0x103   :  { %v106_v7 = vadd.f32 %v128_v5, %v105_v6  ;;  %v141_v8 = vpop.f32.mrb[1].mxu0 }
 0x104   :  { %v108_v9 = vpop.f32.mrb[2].mxu0 }
 0x105   :  { %111 = vst [vmem:[#allocation7] sm:$0xff] %v106_v7  ;;  %v142_v10 = vpop.f32.mrb[3].mxu0 }
 0x106   :  { %207 = shalt.err (!%p204_p6)
}
 0x107   :  { %s208_s2 = scalar_lea.hbm %s300_s3, 128 }
 0x108   :  { %p209_p7 = scmp.ne.s32.totalorder %s300_s3, %s208_s2  ;;  %p212_p8 = scmp.lt.u32.totalorder %s208_s2, %s300_s3 }
 0x10a   :  { %p214_p9 = pnand %p212_p8, %p209_p7 }
 0x10c   :  { %217 = shalt.err (!%p214_p9)
}
 0x10d   :  { %121 = dma.vmem_to_hbm [thread:$0]  %s119_s12, 128, %s300_s3, [#allocation4]  }
 0x10e   :  { %222 = dma.done.wait [#allocation4], 128  }
 0x10f   :  { %223 = vsyncadd [#allocation4], 4294967168 }
 0x110   :  { %125 = vsyncpa [#allocation3], 1 }
 0x111   :  { %126 = vsyncpa [#allocation6], 1 }
 0x112   :  { %127 = vsyncpa [#allocation4], 1 }

// kernel: tpu_custom_call.1
= control target key start
LH: loop header
LB: loop body
LE: loop exit
PB: predicated region body
PF: predicated region fallthrough
CT: control target
= control target key end

     0   :  { %8 = vsyncpa [#allocation3], 0  ;;  %s297_s0 = inlined_call_operand.hbm [shape: f32[8,32], index: 0, kind: input, shape index: {}]   ;;  %s298_s1 = inlined_call_operand.hbm [shape: bf16[32,128], index: 1, kind: input, shape index: {}]   ;;  %s299_s2 = inlined_call_operand.vmem [shape: f32[1,128], index: 2, kind: input, shape index: {}]   ;;  %s300_s3 = inlined_call_operand.hbm [shape: f32[8,128], index: 3, kind: output, shape index: {}]  }
   0x1   :  { %9 = vsyncpa [#allocation6], 0 }
   0x2   :  { %10 = vsyncpa [#allocation4], 0  ;;  %s224_s12 = smov [#allocation2]   ;;  %s225_s14 = smov [#allocation5]  }
   0x3   :  { %s17_s13 = sshll.u32 %s224_s12, 4  ;;  %s26_s15 = sshll.u32 %s225_s14, 4  ;;  %s18_s13 = int_to_ptr.vmem [resolvable:$true] %s17_s13  ;;  %s251_s15 = int_to_ptr.vmem [resolvable:$true] %s26_s15 }
   0x4   :  { %s152_s18 = scalar_lea.hbm %s297_s0, 128 }
   0x5   :  { %p153_p0 = scmp.ne.s32.totalorder %s297_s0, %s152_s18  ;;  %p156_p1 = scmp.lt.u32.totalorder %s152_s18, %s297_s0 }
   0x7   :  { %p158_p2 = pnand %p156_p1, %p153_p0 }
   0x9   :  { %161 = shalt.err (!%p158_p2)
}
   0xa   :  { %s162_s23 = scalar_lea.vmem %s18_s13, 128  ;;  %p167_p4 = scmp.lt.s32.totalorder %s18_s13, %s18_s13 }
   0xb   :  { %p163_p3 = scmp.ne.s32.totalorder %s18_s13, %s162_s23  ;;  %p168_p5 = scmp.lt.s32.totalorder %s162_s23, %s162_s23 }
   0xd   :  { %p169_p6 = por %p168_p5, %p167_p4 }
   0xf   :  { %p170_p7 = pnand %p169_p6, %p163_p3 }
  0x11   :  { %173 = shalt.err (!%p170_p7)
}
  0x12   :  { %20 = dma.hbm_to_vmem [thread:$0]  %s297_s0, 128, %s18_s13, [#allocation3]  }
  0x13   :  { %s174_s28 = scalar_lea.hbm %s298_s1, 256 }
  0x14   :  { %p175_p8 = scmp.ne.s32.totalorder %s298_s1, %s174_s28  ;;  %p178_p9 = scmp.lt.u32.totalorder %s174_s28, %s298_s1 }
  0x16   :  { %p180_p10 = pnand %p178_p9, %p175_p8 }
  0x18   :  { %183 = shalt.err (!%p180_p10)
}
  0x19   :  { %s184_s6 = scalar_lea.vmem %s251_s15, 256  ;;  %p189_p12 = scmp.lt.s32.totalorder %s251_s15, %s251_s15 }
  0x1a   :  { %p185_p11 = scmp.ne.s32.totalorder %s251_s15, %s184_s6  ;;  %p190_p13 = scmp.lt.s32.totalorder %s184_s6, %s184_s6 }
  0x1c   :  { %p191_p0 = por %p190_p13, %p189_p12 }
  0x1e   :  { %p192_p1 = pnand %p191_p0, %p185_p11 }
  0x20   :  { %195 = shalt.err (!%p192_p1)
}
  0x21   :  { %s226_s0 = smov 64   ;;  %s227_s7 = smov 4  }
  0x22   :  { %32 = dma.hbm_to_vmem [thread:$0]  %s298_s1, 256, %s251_s15, [#allocation6], %s226_s0, %s226_s0, %s227_s7  }
  0x23   :  { %218 = dma.done.wait [#allocation3], 128  }
  0x24   :  { %219 = vsyncadd [#allocation3], 4294967168 }
  0x25   :  { %220 = dma.done.wait [#allocation6], 256  }
  0x26   :  { %221 = vsyncadd [#allocation6], 4294967040  ;;  %v228_v0 = vmov 0.0   ;;  %vm229_vm0 = vmmov 0   ;;  %v150_v1 = vld [vmem:[#allocation5] sm:$0xff]   ;;  %v151_v2 = vld [vmem:[#allocation5 + $0x8] sm:$0xff]  }
  0x27   :  { %135 = vmatprep.subr.bf16.mxu0 %v228_v0  ;;  %139 = vmatprep.mubr.msk.bf16.mxu0 %vm229_vm0, %v228_v0  ;;  %v42_v3 = vld [vmem:[#allocation2] sm:$0xff]  ;;  %vm67_vm1 = vcmask 261120   ;;  %s230_s1 = smov [#allocation7]  }
  0x28   :  { %136 = vmatpush3.bf16.msra.mxu0 %v150_v1  ;;  %v43_v4 = vpack.c.bf16 %v42_v3, %v42_v3  ;;  %v128_v5 = vld [vmem:[%s299_s2] ss:$0 sm:$0xff]  ;;  %s118_s12 = sshll.u32 %s230_s1, 4  ;;  %s119_s12 = int_to_ptr.vmem [resolvable:$true] %s118_s12 }
  0x29   :  { %137 = vmatprep.subr.bf16.mxu0 %v228_v0  ;;  %s196_s13 = scalar_lea.vmem %s119_s12, 128  ;;  %p201_p3 = scmp.lt.s32.totalorder %s119_s12, %s119_s12 }
  0x2a   :  { %p197_p2 = scmp.ne.s32.totalorder %s119_s12, %s196_s13  ;;  %p202_p4 = scmp.lt.s32.totalorder %s196_s13, %s196_s13 }
  0x2c   :  { %138 = vmatpush3.bf16.msra.mxu0 %v151_v2  ;;  %p203_p5 = por %p202_p4, %p201_p3 }
  0x2e   :  { %p204_p6 = pnand %p203_p5, %p197_p2 }
  0x2f   :  { %140 = vmatmul.mubr.msk.bf16.vlgmr.msra.gmra.mrb[0].mxu0 %vm67_vm1, %v43_v4 }
 0x102   :  { %v105_v6 = vpop.f32.mrb[0].mxu0 }
 0x103   :  { %v106_v7 = vadd.f32 %v128_v5, %v105_v6  ;;  %v141_v8 = vpop.f32.mrb[1].mxu0 }
 0x104   :  { %v108_v9 = vpop.f32.mrb[2].mxu0 }
 0x105   :  { %111 = vst [vmem:[#allocation7] sm:$0xff] %v106_v7  ;;  %v142_v10 = vpop.f32.mrb[3].mxu0 }
 0x106   :  { %207 = shalt.err (!%p204_p6)
}
 0x107   :  { %s208_s2 = scalar_lea.hbm %s300_s3, 128 }
 0x108   :  { %p209_p7 = scmp.ne.s32.totalorder %s300_s3, %s208_s2  ;;  %p212_p8 = scmp.lt.u32.totalorder %s208_s2, %s300_s3 }
 0x10a   :  { %p214_p9 = pnand %p212_p8, %p209_p7 }
 0x10c   :  { %217 = shalt.err (!%p214_p9)
}
 0x10d   :  { %121 = dma.vmem_to_hbm [thread:$0]  %s119_s12, 128, %s300_s3, [#allocation4]  }
 0x10e   :  { %222 = dma.done.wait [#allocation4], 128  }
 0x10f   :  { %223 = vsyncadd [#allocation4], 4294967168 }
 0x110   :  { %125 = vsyncpa [#allocation3], 1 }
 0x111   :  { %126 = vsyncpa [#allocation6], 1 }
 0x112   :  { %127 = vsyncpa [#allocation4], 1 }

</bundles_post_ra>
